<compile_context>
chip_gen: v6e
topology: v6e:2x2x1
jax: 0.10.0
libtpu: 0.0.40
codegen_flags: <defaults>
</compile_context>

<pallas_src>
import jax
import jax.numpy as jnp
from jax.experimental import pallas as pl
from jax.experimental.pallas import tpu as pltpu


def _round_up(x, m):
    return (x + m - 1) // m * m


def _pick_tm(M, cap=512):
    # Biggest row tile <= cap that still leaves >= 4 grid steps (pipeline
    # depth / v7x dual-TC work split); never below 8 (sublane granularity).
    tm = cap
    while tm > 8 and M < 4 * tm:
        tm //= 2
    return max(tm, 8)


def _matmul_kernel(x_ref, w_ref, o_ref):
    # x_ref: (TM, Kc)  im2col rows for this tile          (VMEM)
    # w_ref: (Kc, Cp)  folded, masked weight (resident)   (VMEM)
    # o_ref: (TM, Cp)  lane-dense output tile             (VMEM)
    o_ref[...] = jnp.dot(
        x_ref[...], w_ref[...], preferred_element_type=jnp.float32
    ).astype(o_ref.dtype)


def dilated_conv2d(x_nchw, weight_oikk, padding):
    """Masked conv2d matching the PyTorch module's forward.

    x_nchw:      (N, Cin, H, W)
    weight_oikk: (Cout, Cin, K, K)  -- already masked
    returns:     (N, Cout, Ho, Wo)  with Ho = H + 2*padding - K + 1
    """
    N, Cin, H, W = x_nchw.shape
    Cout, Cin_w, K, _ = weight_oikk.shape
    assert Cin == Cin_w

    Hp, Wp = H + 2 * padding, W + 2 * padding
    Ho, Wo = Hp - K + 1, Wp - K + 1

    # ---- wrapper-side layout prep (plain JAX / XLA, one pass) --------------
    x_nhwc = jnp.transpose(x_nchw, (0, 2, 3, 1))                  # NHWC
    x_pad = jnp.pad(
        x_nhwc, ((0, 0), (padding, padding), (padding, padding), (0, 0)))

    # im2col with (kh, kw, ci) ordering (must match the folded weight below).
    patches = [x_pad[:, kh:kh + Ho, kw:kw + Wo, :]
               for kh in range(K) for kw in range(K)]
    xcol = jnp.concatenate(patches, axis=-1)                # (N, Ho, Wo, K*K*Cin)
    Kc = K * K * Cin
    M = N * Ho * Wo
    xcol = xcol.reshape(M, Kc)

    # Fold weight to (K*K*Cin, Cout) and pad Cout to a multiple of 128 so the
    # kernel's output stores are lane-dense (unmasked).
    w_fold = jnp.transpose(weight_oikk, (2, 3, 1, 0)).reshape(Kc, Cout)
    Cp = _round_up(Cout, 128)
    w_fold = jnp.pad(w_fold, ((0, 0), (0, Cp - Cout)))

    # Pad M up to the row-tile size.
    TM = _pick_tm(M)
    Mp = _round_up(M, TM)
    xcol = jnp.pad(xcol, ((0, Mp - M), (0, 0)))

    grid = (Mp // TM,)

    # VMEM working set per step: 2*(TM*Kc) + (Kc*Cp) + 2*(TM*Cp) f32 words,
    # comfortably below the 32 MiB scoped default for any reasonable TM/C.
    out = pl.pallas_call(
        _matmul_kernel,
        out_shape=jax.ShapeDtypeStruct((Mp, Cp), x_nchw.dtype),
        grid_spec=pltpu.PrefetchScalarGridSpec(
            num_scalar_prefetch=0,
            grid=grid,
            in_specs=[
                # row tiles of the im2col matrix (full contraction extent)
                pl.BlockSpec((TM, Kc), lambda i: (i, 0)),
                # constant index_map -> weight fetched once, VMEM-resident
                pl.BlockSpec((Kc, Cp), lambda i: (0, 0)),
            ],
            out_specs=pl.BlockSpec((TM, Cp), lambda i: (i, 0)),
        ),
        compiler_params=pltpu.CompilerParams(
            dimension_semantics=("parallel",)),
    )(xcol, w_fold)

    out = out[:M, :Cout].reshape(N, Ho, Wo, Cout)
    return jnp.transpose(out, (0, 3, 1, 2))                       # back to NCHW


def make_masked_weight(dim, kernel, idx_u_mask, idx_v_mask, dtype=jnp.float32):
    # weight = ones(dim, dim, K, K); weight[:, :, idx_u, idx_v] = 0
    w = jnp.ones((dim, dim, kernel, kernel), dtype=dtype)
    idx_u = jnp.asarray(idx_u_mask, dtype=jnp.int32)
    idx_v = jnp.asarray(idx_v_mask, dtype=jnp.int32)
    w = w.at[:, :, idx_u, idx_v].set(0.0)
    return w


if __name__ == "__main__":
    # Small deterministic config consistent with the module.
    dim = 4
    kernel = 3
    padding = 1
    # Mask out the anti-diagonal taps of the 3x3 kernel (deterministic choice).
    idx_u_mask = [0, 1, 2]
    idx_v_mask = [2, 1, 0]

    key = jax.random.PRNGKey(0)
    x = jax.random.normal(key, (2, dim, 16, 16), dtype=jnp.float32)  # NCHW

    w = make_masked_weight(dim, kernel, idx_u_mask, idx_v_mask)

    y = dilated_conv2d(x, w, padding)
    y = jax.block_until_ready(y)

    # Sanity check against XLA's reference convolution (same semantics as
    # F.conv2d on the padded input, stride 1, no bias, dilation 1).
    y_ref = jax.lax.conv_general_dilated(
        x, w, window_strides=(1, 1),
        padding=[(padding, padding), (padding, padding)],
        dimension_numbers=("NCHW", "OIHW", "NCHW"))
    assert y.shape == y_ref.shape
    assert jnp.allclose(y, y_ref, atol=1e-4, rtol=1e-4)

    print("KERNEL_OK")
</pallas_src>

<mosaic_0001>
module attributes {stable_mosaic.version = 11 : i64} {
  func.func @_matmul_kernel(%arg0: i32, %arg1: memref<128x36xf32, #tpu.memory_space<vmem>>, %arg2: memref<36x128xf32, #tpu.memory_space<vmem>>, %arg3: memref<128x128xf32, #tpu.memory_space<vmem>>) attributes {dimension_semantics = [#tpu.dimension_semantics<parallel>], iteration_bounds = array<i64: 4>, scalar_prefetch = 0 : i64, scratch_operands = 0 : i64, tpu.core_type = #tpu.core_type<tc>, window_params = [{transform_indices = @transform_0, window_bounds = array<i64: 128, 36>}, {pipeline_mode = #tpu.pipeline_mode<synchronous>, transform_indices = @transform_1, window_bounds = array<i64: 36, 128>}, {transform_indices = @transform_2, window_bounds = array<i64: 128, 128>}]} {
    %c0 = arith.constant 0 : index
    %c0_0 = arith.constant 0 : index
    %0 = vector.load %arg1[%c0, %c0_0] : memref<128x36xf32, #tpu.memory_space<vmem>>, vector<128x36xf32>
    %c0_1 = arith.constant 0 : index
    %c0_2 = arith.constant 0 : index
    %1 = vector.load %arg2[%c0_1, %c0_2] : memref<36x128xf32, #tpu.memory_space<vmem>>, vector<36x128xf32>
    %cst = arith.constant dense<0.000000e+00> : vector<128x128xf32>
    %2 = tpu.matmul %0, %1, %cst {dimension_numbers = #tpu.dot_dimension_numbers<[1], [0], [0], [1], [0, 0, 1, 1], [], []>} : vector<128x36xf32>, vector<36x128xf32>, vector<128x128xf32> -> vector<128x128xf32>
    %c0_3 = arith.constant 0 : index
    %c0_4 = arith.constant 0 : index
    %3 = vector.load %arg3[%c0_3, %c0_4] : memref<128x128xf32, #tpu.memory_space<vmem>>, vector<128x128xf32>
    tpu.vector_store %arg3[%c0_3, %c0_4], %2 {strides = array<i32>} : memref<128x128xf32, #tpu.memory_space<vmem>>, vector<128x128xf32>,
    return
  }
  func.func @transform_0(%arg0: i32) -> (i32, i32) {
    %c0_i32 = arith.constant 0 : i32
    %c0_i32_0 = arith.constant 0 : i32
    return %arg0, %c0_i32 : i32, i32
  }
  func.func @transform_1(%arg0: i32) -> (i32, i32) {
    %c0_i32 = arith.constant 0 : i32
    %c0_i32_0 = arith.constant 0 : i32
    %c0_i32_1 = arith.constant 0 : i32
    return %c0_i32, %c0_i32_0 : i32, i32
  }
  func.func @transform_2(%arg0: i32) -> (i32, i32) {
    %c0_i32 = arith.constant 0 : i32
    %c0_i32_0 = arith.constant 0 : i32
    return %arg0, %c0_i32 : i32, i32
  }
}

</mosaic_0001>

<bundles_post_ra>
// kernel: tpu_custom_call.1
= control target key start
LH: loop header
LB: loop body
LE: loop exit
PB: predicated region body
PF: predicated region fallthrough
CT: control target
= control target key end

     0   :  { %7 = vsyncpa [#allocation3], 0  ;;  %s845_s0 = inlined_call_operand.vmem [shape: f32[512,36], index: 0, kind: input, shape index: {}]   ;;  %s846_s1 = inlined_call_operand.vmem [shape: f32[36,128], index: 1, kind: input, shape index: {}]   ;;  %s847_s2 = inlined_call_operand.hbm [shape: f32[512,128], index: 2, kind: output, shape index: {}]  }
   0x1   :  { %9 = vsyncpa [#allocation3 + $0x1], 0  ;;  %s672_s9 = smov 0   ;;  %s674_s10 = smov 0  }
   0x2   :  { %s676_s11 = smov 0   ;;  %s678_s12 = smov 0  }
   0x3 LB: > { %s693_s13 = sadd.s32 4294967295, %s652_s12   ;;  %s456_s14 = sadd.s32 4294967294, %s652_s12   ;;  %s652_s12 = sphi %s678_s12, %s853_s12   ;;  %s648_s11 = sphi %s676_s11, %s852_s11   ;;  %s644_s10 = sphi %s674_s10, %s851_s10   ;;  %s640_s9 = sphi %s672_s9, %s850_s9  }
   0x4   : > { %s697_s15 = sadd.s32 1, %s652_s12   ;;  %s69_s16 = sadd.s32 1, %s648_s11 }
   0x5   : > { %s66_s17 = ssub.s32 %s652_s12, %s697_s15  ;;  %p79_p0 = scmp.ne.s32.totalorder %s648_s11, %s644_s10 }
   0x6   : > { %p67_p1 = scmp.eq.s32.totalorder %s66_s17, 0  ;;  %p80_p2 = scmp.eq.s32.totalorder %s693_s13, 3 }
   0x7   : > { %p85_p3 = scmp.ne.s32.totalorder %s644_s10, %s640_s9  ;;  %p86_p4 = scmp.eq.s32.totalorder %s456_s14, 3 }
   0x8   : > { %s708_s18 = scalar_select %p67_p1, %s648_s11, %s69_s16  }
   0x9   : > { %p710_p5 = por %p80_p2, %p79_p0  ;;  %p714_p6 = por %p86_p4, %p85_p3 }
   0xa   : > { %p459_p7 = scmp.ge.s32.totalorder %s652_s12, 1  ;;  %p116_p8 = scmp.lt.s32.totalorder %s652_s12, 5 }
   0xc   : > { %p117_p9 = pnand %p459_p7, %p116_p8 }
   0xd   : > { %s461_s25 = sshll.u32 (!%p117_p9), %s693_s13, 4  ;;  %s135_s8 = sand.u32 (!%p117_p9), 1, %s644_s10  }
   0xe   : > { %120 = sbr.rel (%p117_p9) target bundleno = 252 (0xfc), region = 28  ;;  %p139_p10 = scmp.lt.s32.totalorder (!%p117_p9), %s461_s25, 63 }
   0xf   : > { %s460_s14 = sshll.u32 (!%p117_p9), %s135_s8, 7  ;;  %s485_s17 = sshll.u32 (!%p117_p9), %s693_s13, 11 }
  0x10   : > { %s776_s16 = scalar_lea.vmem (!%p117_p9), [#allocation2], %s460_s14  ;;  %s795_s24 = scalar_lea.hbm (!%p117_p9), %s847_s2, %s485_s17 }
  0x11   : > { %s394_s21 = sshll.u32 (!%p117_p9), %s776_s16, 4  ;;  %s805_s13 = scalar_lea.sflag (!%p117_p9), [#allocation3], %s135_s8  ;;  %s797_s21 = int_to_ptr.vmem [resolvable:$true] %s394_s21 }
  0x12   : > { %s654_s26 = smov (!%p117_p9), [#allocation2]  }
  0x13   : > { %v165_v0 = vld [vmem:[%s846_s1 + $0x20] sm:$0xf]  ;;  %vm215_vm0 = vcmask 1043456   ;;  %v164_v1 = vld [vmem:[%s846_s1 + $0x18] sm:$0xff]  ;;  %v163_v2 = vld [vmem:[%s846_s1 + $0x10] sm:$0xff]  ;;  %s855_s25 = smov (!%p139_p10, %s461_s25), 63 }
  0x14   : > { %507 = vmatprep.subr.msk.mxu0 %vm215_vm0, %v165_v0  ;;  %541 = vmatprep.subr.msk.mxu1 %vm215_vm0, %v165_v0  ;;  %v162_v3 = vld [vmem:[%s846_s1 + $0x8] sm:$0xff]  ;;  %s462_s30 = sshll.u32 %s855_s25, 3  ;;  %v161_v4 = vld [vmem:[%s846_s1] sm:$0xff]  ;;  %vm166_vm1 = vcmask 293888   ;;  %s592_s25 = scalar_lea.vmem %s797_s21, 2048 }
  0x15   : > { %508 = vmatpush3.msk.msra.mxu0 %vm215_vm0, %v165_v0  ;;  %546 = vmatpush3.msk.msra.mxu1 %vm215_vm0, %v165_v0  ;;  %s739_s7 = scalar_lea.vmem %s845_s0, %s462_s30  ;;  %p593_p11 = scmp.ne.s32.totalorder %s797_s21, %s592_s25 }
  0x16   : > { %509 = vmatprep.subr.mxu0 %v164_v1  ;;  %542 = vmatprep.subr.mxu1 %v164_v1  ;;  %v145_v5 = vld [vmem:[%s739_s7] sm:$0xff]  ;;  %v146_v7 = vld [vmem:[%s739_s7 + $0x8] sm:$0xff]  ;;  %v147_v9 = vld [vmem:[%s739_s7 + $0x10] sm:$0xff]  ;;  %s596_s27 = sshll.u32 %s654_s26, 4  ;;  %s597_s27 = int_to_ptr.vmem [resolvable:$false] %s596_s27 }
  0x17   : > { %510 = vmatpush3.msra.mxu0 %v164_v1  ;;  %547 = vmatpush3.msra.mxu1 %v164_v1  ;;  %v153_v6 = vld [vmem:[%s739_s7 + $0x40] sm:$0xff]  ;;  %v154_v8 = vld [vmem:[%s739_s7 + $0x48] sm:$0xff]  ;;  %v155_v10 = vld [vmem:[%s739_s7 + $0x50] sm:$0xff]  ;;  %p594_p12 = pnand %p593_p11, %p710_p5  ;;  %s598_s28 = scalar_lea.vmem %s597_s27, 4096 }
  0x18   : > { %511 = vmatprep.subr.mxu0 %v163_v2  ;;  %543 = vmatprep.subr.mxu1 %v163_v2  ;;  %v148_v11 = vld [vmem:[%s739_s7 + $0x18] sm:$0xff]  ;;  %v149_v13 = vld [vmem:[%s739_s7 + $0x20] sm:$0xff]  ;;  %v150_v15 = vld [vmem:[%s739_s7 + $0x28] sm:$0xff]  ;;  %p599_p0 = scmp.lt.s32.totalorder %s797_s21, %s597_s27  ;;  %p600_p1 = scmp.lt.s32.totalorder %s598_s28, %s592_s25 }
  0x19   : > { %512 = vmatpush3.msra.mxu0 %v163_v2  ;;  %548 = vmatpush3.msra.mxu1 %v163_v2  ;;  %v156_v12 = vld [vmem:[%s739_s7 + $0x58] sm:$0xff]  ;;  %v157_v14 = vld [vmem:[%s739_s7 + $0x60] sm:$0xff]  ;;  %v158_v16 = vld [vmem:[%s739_s7 + $0x68] sm:$0xff]  ;;  %p595_p13 = pneg %p594_p12 }
  0x1a   : > { %513 = vmatprep.subr.mxu0 %v162_v3  ;;  %544 = vmatprep.subr.mxu1 %v162_v3  ;;  %v151_v17 = vld [vmem:[%s739_s7 + $0x30] sm:$0xff]  ;;  %v152_v19 = vld [vmem:[%s739_s7 + $0x38] sm:$0xff]  ;;  %p601_p2 = por %p600_p1, %p599_p0 }
  0x1b   : > { %514 = vmatpush3.msra.mxu0 %v162_v3  ;;  %549 = vmatpush3.msra.mxu1 %v162_v3  ;;  %v159_v18 = vld [vmem:[%s739_s7 + $0x70] sm:$0xff]  ;;  %v160_v20 = vld [vmem:[%s739_s7 + $0x78] sm:$0xff] }
  0x1c   : > { %515 = vmatprep.subr.mxu0 %v161_v4  ;;  %545 = vmatprep.subr.mxu1 %v161_v4  ;;  %p602_p3 = pnand %p601_p2, %p595_p13 }
  0x1d   : > { %516 = vmatpush3.msra.mxu0 %v161_v4  ;;  %550 = vmatpush3.msra.mxu1 %v161_v4 }
  0x1e   : > { %517 = vmatprep.mubr.msk.f32.mxu0 %vm166_vm1, %v145_v5  ;;  %529 = vmatprep.mubr.msk.f32.mxu1 %vm166_vm1, %v153_v6 }
  0x1f   : > { %518 = vmatmul.mubr.msk.f32.vlgmr.msra.gmra.mxu0 %vm166_vm1, %v146_v7  ;;  %530 = vmatmul.mubr.msk.f32.vlgmr.msra.gmra.mxu1 %vm166_vm1, %v154_v8 }
  0x20   : > { %520 = vmatprep.mubr.msk.f32.mxu0 %vm166_vm1, %v147_v9  ;;  %532 = vmatprep.mubr.msk.f32.mxu1 %vm166_vm1, %v155_v10 }
  0x23   : > { %521 = vmatmul.mubr.msk.f32.gmra.mxu0 %vm166_vm1, %v148_v11  ;;  %533 = vmatmul.mubr.msk.f32.gmra.mxu1 %vm166_vm1, %v156_v12 }
  0x24   : > { %523 = vmatprep.mubr.msk.f32.mxu0 %vm166_vm1, %v149_v13  ;;  %535 = vmatprep.mubr.msk.f32.mxu1 %vm166_vm1, %v157_v14 }
  0x27   : > { %524 = vmatmul.mubr.msk.f32.gmra.mxu0 %vm166_vm1, %v150_v15  ;;  %536 = vmatmul.mubr.msk.f32.gmra.mxu1 %vm166_vm1, %v158_v16 }
  0x28   : > { %526 = vmatprep.mubr.msk.f32.mxu0 %vm166_vm1, %v151_v17  ;;  %538 = vmatprep.mubr.msk.f32.mxu1 %vm166_vm1, %v159_v18 }
  0x2b   : > { %527 = vmatmul.mubr.msk.f32.gmra.mxu0 %vm166_vm1, %v152_v19  ;;  %539 = vmatmul.mubr.msk.f32.gmra.mxu1 %vm166_vm1, %v160_v20 }
  0xdf   : > { %v519_v21 = vpop.f32.mrf.mxu0  ;;  %v531_v22 = vpop.f32.mrf.mxu1 }
  0xe0   : > { %365 = vst [vmem:[%s776_s16 + $0x8] sm:$0xff] %v519_v21  ;;  %373 = vst [vmem:[%s776_s16 + $0x48] sm:$0xff] %v531_v22 }
  0xe1   : > { %v285_v23 = vpop.f32.mrf.mxu0  ;;  %v325_v24 = vpop.f32.mrf.mxu1 }
  0xe2   : > { %364 = vst [vmem:[%s776_s16] sm:$0xff] %v285_v23  ;;  %372 = vst [vmem:[%s776_s16 + $0x40] sm:$0xff] %v325_v24 }
  0xe3   : > { %v522_v25 = vpop.f32.mrf.mxu0  ;;  %v534_v26 = vpop.f32.mrf.mxu1 }
  0xe4   : > { %367 = vst [vmem:[%s776_s16 + $0x18] sm:$0xff] %v522_v25  ;;  %375 = vst [vmem:[%s776_s16 + $0x58] sm:$0xff] %v534_v26 }
  0xe5   : > { %v295_v27 = vpop.f32.mrf.mxu0  ;;  %v335_v28 = vpop.f32.mrf.mxu1 }
  0xe6   : > { %366 = vst [vmem:[%s776_s16 + $0x10] sm:$0xff] %v295_v27  ;;  %374 = vst [vmem:[%s776_s16 + $0x50] sm:$0xff] %v335_v28 }
  0xe7   : > { %v525_v29 = vpop.f32.mrf.mxu0  ;;  %v537_v30 = vpop.f32.mrf.mxu1 }
  0xe8   : > { %369 = vst [vmem:[%s776_s16 + $0x28] sm:$0xff] %v525_v29  ;;  %377 = vst [vmem:[%s776_s16 + $0x68] sm:$0xff] %v537_v30 }
  0xe9   : > { %v305_v31 = vpop.f32.mrf.mxu0  ;;  %v345_v32 = vpop.f32.mrf.mxu1 }
  0xea   : > { %368 = vst [vmem:[%s776_s16 + $0x20] sm:$0xff] %v305_v31  ;;  %376 = vst [vmem:[%s776_s16 + $0x60] sm:$0xff] %v345_v32 }
  0xeb   : > { %v528_v33 = vpop.f32.mrf.mxu0  ;;  %v540_v34 = vpop.f32.mrf.mxu1 }
  0xec   : > { %371 = vst [vmem:[%s776_s16 + $0x38] sm:$0xff] %v528_v33  ;;  %379 = vst [vmem:[%s776_s16 + $0x78] sm:$0xff] %v540_v34 }
  0xed   : > { %v315_v35 = vpop.f32.mrf.mxu0  ;;  %v355_v36 = vpop.f32.mrf.mxu1 }
  0xee   : > { %370 = vst [vmem:[%s776_s16 + $0x30] sm:$0xff] %v315_v35  ;;  %378 = vst [vmem:[%s776_s16 + $0x70] sm:$0xff] %v355_v36 }
  0xef   : > { %605 = shalt.err (!%p602_p3)
}
  0xf0   : > { %s606_s29 = scalar_lea.hbm %s795_s24, 2048  ;;  %s610_s4 = scalar_lea.hbm %s847_s2, 8192 }
  0xf1   : > { %p607_p4 = scmp.ne.s32.totalorder %s795_s24, %s606_s29  ;;  %p611_p9 = scmp.lt.s32.totalorder %s795_s24, %s847_s2 }
  0xf2   : > { %p612_p10 = scmp.lt.s32.totalorder %s610_s4, %s606_s29 }
  0xf3   : > { %p608_p7 = pnand %p607_p4, %p710_p5 }
  0xf4   : > { %p613_p11 = por %p612_p10, %p611_p9 }
  0xf5   : > { %p609_p8 = pneg %p608_p7 }
  0xf7   : > { %p614_p12 = pnand %p613_p11, %p609_p8 }
  0xf9   : > { %617 = shalt.err (!%p614_p12)
}
  0xfa   : > { %s655_s7 = smov 128   ;;  %s656_s8 = smov 8  }
  0xfb   : > { %551 = dma.vmem_to_hbm [thread:$0]  (%p710_p5), %s797_s21, 2048, %s795_s24, %s805_s13, %s655_s7, %s655_s7, %s656_s8  }
  0xfc PF: > { %p557_p13 = scmp.ge.s32.totalorder %s652_s12, 2  ;;  %s409_s14 = sand.u32 1, %s640_s9  }
  0xfd   : > { %s410_s16 = scalar_lea.sflag [#allocation3], %s409_s14 }
  0xfe   : > { %p554_p0 = pnand %p557_p13, %p714_p6 }
 0x100   : > { %p555_p1 = pneg %p554_p0 }
 0x102   : > { %635 = dma.done.wait (%p555_p1), %s410_s16, 2048  }
 0x103   : > { %637 = vsyncadd (%p555_p1), %s410_s16, 4294965248  ;;  %p12_p2 = scmp.ge.s32.totalorder %s697_s15, 6   ;;  %s850_s9 = smov %s644_s10 }
 0x104   : > { %s851_s10 = smov %s648_s11  ;;  %s852_s11 = smov %s708_s18 }
 0x105   : > { %s853_s12 = smov %s697_s15  ;;  %14 = sbr.rel (!%p12_p2) target bundleno = 3 (0x3), region = 63 }
 0x10a   :  { %415 = vsyncpa [#allocation3], 1 }
 0x10b   :  { %417 = vsyncpa [#allocation3 + $0x1], 1 }

</bundles_post_ra>
